<compile_context>
chip_gen: v6e
topology: v6e:2x2x1
jax: 0.10.0
libtpu: 0.0.40
codegen_flags: <defaults>
</compile_context>

<pallas_src>
import functools

import jax
import jax.numpy as jnp
from jax.experimental import pallas as pl
from jax.experimental.pallas import tpu as pltpu

LANE = 128
SUBLANE = 8


def _round_up(n: int, m: int) -> int:
    return ((n + m - 1) // m) * m


def _pick_tile(batch: int, tm_request: int) -> int:
    """Batch-tile size in lanes: multiple of 128, <= request, prefer a divisor of
    the 128-aligned batch (no extra padding), keep >=4 grid steps when the batch
    is large enough (v7x has 2 TensorCores; also helps pipelining)."""
    n = max(1, _round_up(batch, LANE) // LANE)            # lane groups covering batch
    req = max(1, min(_round_up(tm_request, LANE) // LANE, n))
    if n >= 8:
        req = min(req, max(1, n // 4))
    div = max(d for d in range(1, req + 1) if n % d == 0)  # largest exact divisor
    groups = div if div * 2 >= req else req                # pad batch only if divisor is tiny
    return groups * LANE


def addition_mlp_kernel(xt_ref, w1_ref, b1_ref, w2_ref, b2_ref, o_ref, *,
                        in_dim, out_dim, chunk, n_chunks):
    """One batch tile, feature-major: xt (in_dim, TM) -> o (out_dim, TM)."""
    w1 = w1_ref[...]        # (h_pad, in_dim)  resident, tiny
    b1 = b1_ref[...]        # (h_pad, 1)
    w2 = w2_ref[...]        # (h_pad, out_dim)
    b2 = b2_ref[...]        # (out_dim, 1)

    # Static sub-chunk loop: aligned static slices, hidden activation stays in vregs.
    for c in range(n_chunks):
        lo, hi = c * chunk, (c + 1) * chunk
        xc = xt_ref[:, lo:hi]                             # (in_dim, chunk)

        # Layer 1 on the VPU: contraction dim is tiny (in_dim=2), so unrolled
        # broadcast multiply-adds beat a degenerate MXU matmul padded to K=128.
        h = w1[:, 0:1] * xc[0:1, :]
        for k in range(1, in_dim):
            h = h + w1[:, k:k + 1] * xc[k:k + 1, :]
        h = jnp.maximum(h + b1, 0.0)                      # (h_pad, chunk), ReLU

        # Layer 2: VPU multiply + XLU sublane reduce per output feature.
        # Zero-padded hidden rows contribute exactly 0 (relu(0)=0, w2 pad = 0).
        for o in range(out_dim):
            y = jnp.sum(h * w2[:, o:o + 1], axis=0, keepdims=True)   # (1, chunk)
            o_ref[o:o + 1, lo:hi] = y + b2[o:o + 1, 0:1]


@functools.partial(jax.jit, static_argnames=("tm",))
def addition_model(x, w1, b1, w2, b2, *, tm=8192):
    """Pallas forward pass.

    x:  (B, in_dim) float32
    w1: (in_dim, 100)  b1: (1, 100)     (weights pre-transposed vs. PyTorch)
    w2: (100, out_dim) b2: (1, out_dim)
    """
    B, in_dim = x.shape
    hidden = w1.shape[1]
    out_dim = w2.shape[1]
    h_pad = _round_up(hidden, SUBLANE)                    # 100 -> 104 (sublane aligned)

    tm_eff = _pick_tile(B, min(tm, 16384))
    b_pad = _round_up(_round_up(B, LANE), tm_eff)
    chunk = 256 if tm_eff % 256 == 0 else 128
    n_chunks = tm_eff // chunk

    # Feature-major x: batch along lanes -> lane-dense, contiguous DMAs.
    xt = jnp.pad(x.T, ((0, 0), (0, b_pad - B)))           # (in_dim, b_pad)

    # Tiny resident weight operands; zero padding of hidden rows is exact.
    w1k = jnp.pad(w1.T, ((0, h_pad - hidden), (0, 0)))    # (h_pad, in_dim)
    b1k = jnp.pad(b1.T, ((0, h_pad - hidden), (0, 0)))    # (h_pad, 1)
    w2k = jnp.pad(w2, ((0, h_pad - hidden), (0, 0)))      # (h_pad, out_dim)
    b2k = b2.T                                            # (out_dim, 1)

    kernel = functools.partial(addition_mlp_kernel, in_dim=in_dim,
                               out_dim=out_dim, chunk=chunk, n_chunks=n_chunks)

    out = pl.pallas_call(
        kernel,
        out_shape=jax.ShapeDtypeStruct((out_dim, b_pad), jnp.float32),
        grid=(b_pad // tm_eff,),
        in_specs=[
            pl.BlockSpec((in_dim, tm_eff), lambda i: (0, i)),   # x tile streams
            pl.BlockSpec((h_pad, in_dim), lambda i: (0, 0)),    # weights resident
            pl.BlockSpec((h_pad, 1), lambda i: (0, 0)),
            pl.BlockSpec((h_pad, out_dim), lambda i: (0, 0)),
            pl.BlockSpec((out_dim, 1), lambda i: (0, 0)),
        ],
        out_specs=pl.BlockSpec((out_dim, tm_eff), lambda i: (0, i)),
        compiler_params=pltpu.CompilerParams(
            dimension_semantics=("parallel",)),                 # megacore on v7x
    )(xt, w1k, b1k, w2k, b2k)

    # Drop lane padding and return batch-major (B, out_dim).
    return out[:, :B].T


def init_params(key, input_dim=2, hidden_dim=100, output_dim=1):
    """Deterministic init matching nn.Linear shapes (weights pre-transposed)."""
    k1, k2, k3, k4 = jax.random.split(key, 4)
    bound1 = 1.0 / jnp.sqrt(input_dim)
    bound2 = 1.0 / jnp.sqrt(hidden_dim)
    w1 = jax.random.uniform(k1, (input_dim, hidden_dim), jnp.float32, -bound1, bound1)
    b1 = jax.random.uniform(k2, (1, hidden_dim), jnp.float32, -bound1, bound1)
    w2 = jax.random.uniform(k3, (hidden_dim, output_dim), jnp.float32, -bound2, bound2)
    b2 = jax.random.uniform(k4, (1, output_dim), jnp.float32, -bound2, bound2)
    return w1, b1, w2, b2


if __name__ == "__main__":
    key = jax.random.PRNGKey(0)
    k_x, k_p = jax.random.split(key)

    batch, input_dim, output_dim = 8, 2, 1
    x = jax.random.normal(k_x, (batch, input_dim), jnp.float32)
    w1, b1, w2, b2 = init_params(k_p, input_dim=input_dim, output_dim=output_dim)

    out = addition_model(x, w1, b1, w2, b2)
    out = jax.block_until_ready(out)

    # Reference check in plain JAX.
    ref = jnp.maximum(x @ w1 + b1, 0.0) @ w2 + b2
    assert out.shape == (batch, output_dim)
    assert jnp.allclose(out, ref, atol=1e-5, rtol=1e-5)

    # Larger, non-multiple batch exercises the tile-picker / multi-step grid path.
    xb = jax.random.normal(k_x, (3000, input_dim), jnp.float32)
    outb = jax.block_until_ready(addition_model(xb, w1, b1, w2, b2))
    refb = jnp.maximum(xb @ w1 + b1, 0.0) @ w2 + b2
    assert outb.shape == (3000, output_dim)
    assert jnp.allclose(outb, refb, atol=1e-5, rtol=1e-5)

    print("KERNEL_OK")
</pallas_src>

<mosaic_0001>
module attributes {stable_mosaic.version = 11 : i64} {
  func.func @addition_mlp_kernel(%arg0: i32, %arg1: memref<2x128xf32, #tpu.memory_space<vmem>>, %arg2: memref<104x2xf32, #tpu.memory_space<vmem>>, %arg3: memref<104x1xf32, #tpu.memory_space<vmem>>, %arg4: memref<104x1xf32, #tpu.memory_space<vmem>>, %arg5: memref<1x1xf32, #tpu.memory_space<vmem>>, %arg6: memref<1x128xf32, #tpu.memory_space<vmem>>) attributes {dimension_semantics = [#tpu.dimension_semantics<parallel>], iteration_bounds = array<i64: 1>, scalar_prefetch = 0 : i64, scratch_operands = 0 : i64, tpu.core_type = #tpu.core_type<tc>, window_params = [{transform_indices = @transform_0, window_bounds = array<i64: 2, 128>}, {pipeline_mode = #tpu.pipeline_mode<synchronous>, transform_indices = @transform_1, window_bounds = array<i64: 104, 2>}, {pipeline_mode = #tpu.pipeline_mode<synchronous>, transform_indices = @transform_2, window_bounds = array<i64: 104, 1>}, {pipeline_mode = #tpu.pipeline_mode<synchronous>, transform_indices = @transform_3, window_bounds = array<i64: 104, 1>}, {pipeline_mode = #tpu.pipeline_mode<synchronous>, transform_indices = @transform_4, window_bounds = array<i64: 1, 1>}, {transform_indices = @transform_5, window_bounds = array<i64: 1, 128>}]} {
    %c0 = arith.constant 0 : index
    %c0_0 = arith.constant 0 : index
    %0 = vector.load %arg2[%c0, %c0_0] : memref<104x2xf32, #tpu.memory_space<vmem>>, vector<104x2xf32>
    %c0_1 = arith.constant 0 : index
    %c0_2 = arith.constant 0 : index
    %1 = vector.load %arg3[%c0_1, %c0_2] : memref<104x1xf32, #tpu.memory_space<vmem>>, vector<104x1xf32>
    %c0_3 = arith.constant 0 : index
    %c0_4 = arith.constant 0 : index
    %2 = vector.load %arg4[%c0_3, %c0_4] : memref<104x1xf32, #tpu.memory_space<vmem>>, vector<104x1xf32>
    %c0_5 = arith.constant 0 : index
    %c0_6 = arith.constant 0 : index
    %3 = vector.load %arg5[%c0_5, %c0_6] : memref<1x1xf32, #tpu.memory_space<vmem>>, vector<1x1xf32>
    %c0_7 = arith.constant 0 : index
    %c0_8 = arith.constant 0 : index
    %4 = vector.load %arg1[%c0_7, %c0_8] : memref<2x128xf32, #tpu.memory_space<vmem>>, vector<2x128xf32>
    %5 = vector.extract_strided_slice %0 {offsets = [0, 0], sizes = [104, 1], strides = [1, 1]} : vector<104x2xf32> to vector<104x1xf32>
    %6 = vector.extract_strided_slice %4 {offsets = [0, 0], sizes = [1, 128], strides = [1, 1]} : vector<2x128xf32> to vector<1x128xf32>
    %7 = vector.broadcast %5 : vector<104x1xf32> to vector<104x128xf32>
    %8 = vector.broadcast %6 : vector<1x128xf32> to vector<104x128xf32>
    %9 = arith.mulf %7, %8 : vector<104x128xf32>
    %10 = vector.extract_strided_slice %0 {offsets = [0, 1], sizes = [104, 1], strides = [1, 1]} : vector<104x2xf32> to vector<104x1xf32>
    %11 = vector.extract_strided_slice %4 {offsets = [1, 0], sizes = [1, 128], strides = [1, 1]} : vector<2x128xf32> to vector<1x128xf32>
    %12 = vector.broadcast %10 : vector<104x1xf32> to vector<104x128xf32>
    %13 = vector.broadcast %11 : vector<1x128xf32> to vector<104x128xf32>
    %14 = arith.mulf %12, %13 : vector<104x128xf32>
    %15 = arith.addf %9, %14 : vector<104x128xf32>
    %16 = vector.broadcast %1 : vector<104x1xf32> to vector<104x128xf32>
    %17 = arith.addf %15, %16 : vector<104x128xf32>
    %cst = arith.constant 0.000000e+00 : f32
    %18 = vector.broadcast %cst : f32 to vector<104x128xf32>
    %19 = arith.maximumf %17, %18 : vector<104x128xf32>
    %20 = vector.broadcast %2 : vector<104x1xf32> to vector<104x128xf32>
    %21 = arith.mulf %19, %20 : vector<104x128xf32>
    %cst_9 = arith.constant dense<0.000000e+00> : vector<128xf32>
    %22 = vector.multi_reduction <add>, %21, %cst_9 [0] : vector<104x128xf32> to vector<128xf32>
    %23 = vector.shape_cast %22 : vector<128xf32> to vector<1x128xf32>
    %24 = vector.broadcast %3 : vector<1x1xf32> to vector<1x128xf32>
    %25 = arith.addf %23, %24 : vector<1x128xf32>
    %c0_10 = arith.constant 0 : index
    %c0_11 = arith.constant 0 : index
    %26 = vector.load %arg6[%c0_10, %c0_11] : memref<1x128xf32, #tpu.memory_space<vmem>>, vector<1x128xf32>
    tpu.vector_store %arg6[%c0_10, %c0_11], %25 {strides = array<i32>} : memref<1x128xf32, #tpu.memory_space<vmem>>, vector<1x128xf32>,
    return
  }
  func.func @transform_0(%arg0: i32) -> (i32, i32) {
    %c0_i32 = arith.constant 0 : i32
    %c0_i32_0 = arith.constant 0 : i32
    return %c0_i32, %arg0 : i32, i32
  }
  func.func @transform_1(%arg0: i32) -> (i32, i32) {
    %c0_i32 = arith.constant 0 : i32
    %c0_i32_0 = arith.constant 0 : i32
    %c0_i32_1 = arith.constant 0 : i32
    return %c0_i32, %c0_i32_0 : i32, i32
  }
  func.func @transform_2(%arg0: i32) -> (i32, i32) {
    %c0_i32 = arith.constant 0 : i32
    %c0_i32_0 = arith.constant 0 : i32
    %c0_i32_1 = arith.constant 0 : i32
    return %c0_i32, %c0_i32_0 : i32, i32
  }
  func.func @transform_3(%arg0: i32) -> (i32, i32) {
    %c0_i32 = arith.constant 0 : i32
    %c0_i32_0 = arith.constant 0 : i32
    %c0_i32_1 = arith.constant 0 : i32
    return %c0_i32, %c0_i32_0 : i32, i32
  }
  func.func @transform_4(%arg0: i32) -> (i32, i32) {
    %c0_i32 = arith.constant 0 : i32
    %c0_i32_0 = arith.constant 0 : i32
    %c0_i32_1 = arith.constant 0 : i32
    return %c0_i32, %c0_i32_0 : i32, i32
  }
  func.func @transform_5(%arg0: i32) -> (i32, i32) {
    %c0_i32 = arith.constant 0 : i32
    %c0_i32_0 = arith.constant 0 : i32
    return %c0_i32, %arg0 : i32, i32
  }
}

</mosaic_0001>

<bundles_post_ra>
// kernel: addition_model.1
= control target key start
LH: loop header
LB: loop body
LE: loop exit
PB: predicated region body
PF: predicated region fallthrough
CT: control target
= control target key end

     0   :  { %v436_v0 = vmov 1   ;;  %v437_v1 = vmov 0   ;;  %v128_v63 = vlaneseq  ;;  %s674_s1 = inlined_call_operand.vmem [shape: f32[104,2], index: 1, kind: input, shape index: {}]   ;;  %s675_s4 = inlined_call_operand.<no memory space> [shape: f32[1,1], index: 4, kind: input, shape index: {}]   ;;  %s676_s2 = inlined_call_operand.vmem [shape: f32[104,1], index: 2, kind: input, shape index: {}]   ;;  %s677_s3 = inlined_call_operand.vmem [shape: f32[104,1], index: 3, kind: input, shape index: {}]   ;;  %s678_s0 = inlined_call_operand.vmem [shape: f32[2,128], index: 0, kind: input, shape index: {}]   ;;  %s679_s5 = inlined_call_operand.vmem [shape: f32[1,128], index: 5, kind: output, shape index: {}]  }
   0x1   :  { %433 = vset.pattern.permute.xlu0 %v436_v0  ;;  %431 = vset.pattern.permute.xlu1 %v437_v1  ;;  %v24_v2 = vld [vmem:[%s674_s1 + $0x10] sm:$0xff]  ;;  %v23_v3 = vld [vmem:[%s674_s1 + $0x8] sm:$0xff]  ;;  %v10_v4 = vstv %s675_s4  ;;  %v25_v5 = vld [vmem:[%s674_s1 + $0x18] sm:$0xff] }
   0x2   :  { %75 = vperm.xlu1 %431, %v24_v2   ;;  %150 = vperm.xlu0 %433, %v23_v3   ;;  %11 = vst [vmem:[#allocation2] sm:$0x1] %v10_v4  ;;  %v26_v6 = vld [vmem:[%s674_s1 + $0x20] sm:$0xff]  ;;  %v27_v7 = vld [vmem:[%s674_s1 + $0x28] sm:$0xff]  ;;  %v28_v8 = vld [vmem:[%s674_s1 + $0x30] sm:$0xff] }
   0x3   :  { %v29_v9 = vld [vmem:[%s674_s1 + $0x38] sm:$0xff]  ;;  %v30_v10 = vld [vmem:[%s674_s1 + $0x40] sm:$0xff]  ;;  %v31_v11 = vld [vmem:[%s674_s1 + $0x48] sm:$0xff] }
   0x4   :  { %v32_v12 = vld [vmem:[%s674_s1 + $0x50] sm:$0xff]  ;;  %v33_v13 = vld [vmem:[%s674_s1 + $0x58] sm:$0xff]  ;;  %v34_v14 = vld [vmem:[%s674_s1 + $0x60] sm:$0xff] }
   0x5   :  { %v22_v15 = vld [vmem:[%s674_s1] sm:$0xff]  ;;  %v36_v16 = vld [vmem:[%s676_s2 + $0x8] sm:$0xff]  ;;  %v37_v19 = vld [vmem:[%s676_s2 + $0x10] sm:$0xff] }
   0x6   :  { %80 = vperm.xlu1 %431, %v25_v5   ;;  %162 = vperm.xlu0 %433, %v26_v6   ;;  %v35_v17 = vld [vmem:[%s676_s2] sm:$0xff]  ;;  %v38_v21 = vld [vmem:[%s676_s2 + $0x18] sm:$0xff]  ;;  %v40_v22 = vld [vmem:[%s676_s2 + $0x28] sm:$0xff] }
   0x7   :  { %v48_v18 = vld [vmem:[%s677_s3] sm:$0xff]  ;;  %v49_v23 = vld [vmem:[%s677_s3 + $0x8] sm:$0xff]  ;;  %v41_v24 = vld [vmem:[%s676_s2 + $0x30] sm:$0xff] }
   0x8   :  { %v39_v20 = vld [vmem:[%s676_s2 + $0x20] sm:$0xff]  ;;  %v50_v25 = vld [vmem:[%s677_s3 + $0x10] sm:$0xff]  ;;  %v42_v26 = vld [vmem:[%s676_s2 + $0x38] sm:$0xff] }
   0x9   :  { %v51_v27 = vld [vmem:[%s677_s3 + $0x18] sm:$0xff]  ;;  %v43_v28 = vld [vmem:[%s676_s2 + $0x40] sm:$0xff]  ;;  %v44_v30 = vld [vmem:[%s676_s2 + $0x48] sm:$0xff] }
   0xa   :  { %90 = vperm.xlu1 %431, %v27_v7   ;;  %170 = vperm.xlu0 %433, %v28_v8   ;;  %v52_v29 = vld [vmem:[%s677_s3 + $0x20] sm:$0xff]  ;;  %v53_v31 = vld [vmem:[%s677_s3 + $0x28] sm:$0xff]  ;;  %v45_v32 = vld [vmem:[%s676_s2 + $0x50] sm:$0xff] }
   0xb   :  { %v54_v33 = vld [vmem:[%s677_s3 + $0x30] sm:$0xff]  ;;  %v46_v34 = vld [vmem:[%s676_s2 + $0x58] sm:$0xff]  ;;  %v47_v36 = vld [vmem:[%s676_s2 + $0x60] sm:$0xff] }
   0xc   :  { %v55_v35 = vld [vmem:[%s677_s3 + $0x38] sm:$0xff]  ;;  %v56_v37 = vld [vmem:[%s677_s3 + $0x40] sm:$0xff]  ;;  %v57_v39 = vld [vmem:[%s677_s3 + $0x48] sm:$0xff] }
   0xd   :  { %v59_v38 = vld [vmem:[%s677_s3 + $0x58] sm:$0xff]  ;;  %v61_v40 = vld [vmem:[#allocation2] sm:$0x1]  ;;  %v58_v41 = vld [vmem:[%s677_s3 + $0x50] sm:$0xff] }
   0xe   :  { %100 = vperm.xlu1 %431, %v29_v9   ;;  %178 = vperm.xlu0 %433, %v30_v10   ;;  %v60_v42 = vld [vmem:[%s677_s3 + $0x60] sm:$0xff] }
  0x12   :  { %110 = vperm.xlu1 %431, %v31_v11   ;;  %186 = vperm.xlu0 %433, %v32_v12  }
  0x16   :  { %120 = vperm.xlu1 %431, %v33_v13   ;;  %194 = vperm.xlu0 %433, %v34_v14  }
  0x1a   :  { %432 = vset.pattern.permute.xlu1 %v436_v0  ;;  %434 = vset.pattern.permute.xlu0 %v437_v1 }
  0x1b   :  { %65 = vperm.xlu0 %434, %v22_v15   ;;  %146 = vperm.xlu1 %432, %v22_v15  }
  0x1f   :  { %70 = vperm.xlu0 %434, %v23_v3   ;;  %154 = vperm.xlu1 %432, %v24_v2   ;;  %v608_v2 = vshrl.u32 %v128_v63, 7 }
  0x23   :  { %85 = vperm.xlu0 %434, %v26_v6   ;;  %158 = vperm.xlu1 %432, %v25_v5   ;;  %v130_v5 = vsub.s32 0, %v608_v2  ;;  %v199_v6 = vsub.s32 1, %v608_v2 }
  0x27   :  { %95 = vperm.xlu0 %434, %v28_v8   ;;  %166 = vperm.xlu1 %432, %v27_v7  }
  0x2b   :  { %105 = vperm.xlu0 %434, %v30_v10   ;;  %174 = vperm.xlu1 %432, %v29_v9   ;;  %v62_v9 = vld [vmem:[%s678_s0] sm:$0x3] }
  0x2c   :  { %v625_v10 = vrot.slane %v62_v9, %v130_v5 }
  0x2f   :  { %115 = vperm.xlu0 %434, %v32_v12   ;;  %182 = vperm.xlu1 %432, %v31_v11   ;;  %v627_v11 = vrot.slane %v62_v9, %v199_v6 }
  0x33   :  { %125 = vperm.xlu0 %434, %v34_v14   ;;  %190 = vperm.xlu1 %432, %v33_v13  }
  0x37   :  { %234 = vperm.xlu0 %434, %v36_v16   ;;  %435 = vset.pattern.permute.xlu1 %v437_v1 }
  0x38   :  { %229 = vperm.xlu1 %435, %v35_v17  }
  0x3b   :  { %320 = vperm.xlu0 %434, %v48_v18  }
  0x3c   :  { %239 = vperm.xlu1 %435, %v37_v19  }
  0x3f   :  { %249 = vperm.xlu0 %434, %v39_v20  }
  0x40   :  { %244 = vperm.xlu1 %435, %v38_v21  }
  0x43   :  { %254 = vperm.xlu0 %434, %v40_v22  }
  0x44   :  { %325 = vperm.xlu1 %435, %v49_v23  }
  0x47   :  { %259 = vperm.xlu0 %434, %v41_v24  }
  0x48   :  { %330 = vperm.xlu1 %435, %v50_v25  }
  0x4b   :  { %264 = vperm.xlu0 %434, %v42_v26  }
  0x4c   :  { %335 = vperm.xlu1 %435, %v51_v27  }
  0x4f   :  { %269 = vperm.xlu0 %434, %v43_v28  }
  0x50   :  { %340 = vperm.xlu1 %435, %v52_v29  }
  0x53   :  { %274 = vperm.xlu0 %434, %v44_v30  }
  0x54   :  { %345 = vperm.xlu1 %435, %v53_v31  }
  0x57   :  { %279 = vperm.xlu0 %434, %v45_v32  }
  0x58   :  { %350 = vperm.xlu1 %435, %v54_v33  }
  0x5b   :  { %284 = vperm.xlu0 %434, %v46_v34  }
  0x5c   :  { %355 = vperm.xlu1 %435, %v55_v35  }
  0x5f   :  { %289 = vperm.xlu0 %434, %v47_v36  }
  0x60   :  { %360 = vperm.xlu1 %435, %v56_v37  }
  0x63   :  { %375 = vperm.xlu0 %434, %v59_v38  }
  0x64   :  { %365 = vperm.xlu1 %435, %v57_v39  }
  0x67   :  { %416 = vperm.xlu0 %434, %v61_v40  }
  0x68   :  { %370 = vperm.xlu1 %435, %v58_v41  }
  0x6c   :  { %380 = vperm.xlu1 %435, %v60_v42  }
  0x7d   :  { %v76_v43 = vpop.permute.xlu1 %75  ;;  %v151_v44 = vpop.permute.xlu0 %150 }
  0x7e   :  { %v202_v17 = vmul.f32 %v627_v11, %v151_v44  ;;  %v134_v23 = vmul.f32 %v625_v10, %v76_v43 }
  0x81   :  { %v81_v45 = vpop.permute.xlu1 %80  ;;  %v163_v46 = vpop.permute.xlu0 %162 }
  0x82   :  { %v135_v30 = vmul.f32 %v625_v10, %v81_v45  ;;  %v205_v39 = vmul.f32 %v627_v11, %v163_v46 }
  0x85   :  { %v588_v47 = vpop.permute.xlu1 %90  ;;  %v590_v48 = vpop.permute.xlu0 %170 }
  0x89   :  { %v592_v49 = vpop.permute.xlu1 %100  ;;  %v594_v50 = vpop.permute.xlu0 %178 }
  0x8d   :  { %v596_v51 = vpop.permute.xlu1 %110  ;;  %v598_v52 = vpop.permute.xlu0 %186 }
  0x91   :  { %v600_v53 = vpop.permute.xlu1 %120  ;;  %v602_v54 = vpop.permute.xlu0 %194 }
  0x96   :  { %v66_v55 = vpop.permute.xlu0 %65  ;;  %v147_v56 = vpop.permute.xlu1 %146 }
  0x97   :  { %v132_v14 = vmul.f32 %v625_v10, %v66_v55  ;;  %v201_v15 = vmul.f32 %v627_v11, %v147_v56 }
  0x99   :  { %v214_v22 = vadd.f32 %v201_v15, %v132_v14  ;;  %v207_v14 = vmul.f32 %v627_v11, %v590_v48 }
  0x9a   :  { %v71_v57 = vpop.permute.xlu0 %70  ;;  %v155_v58 = vpop.permute.xlu1 %154 }
  0x9b   :  { %v133_v16 = vmul.f32 %v625_v10, %v71_v57  ;;  %v203_v20 = vmul.f32 %v627_v11, %v155_v58  ;;  %v137_v58 = vmul.f32 %v625_v10, %v588_v47 }
  0x9d   :  { %v215_v21 = vadd.f32 %v202_v17, %v133_v16  ;;  %v216_v29 = vadd.f32 %v203_v20, %v134_v23 }
  0x9e   :  { %v86_v59 = vpop.permute.xlu0 %85  ;;  %v159_v60 = vpop.permute.xlu1 %158 }
  0x9f   :  { %v204_v28 = vmul.f32 %v627_v11, %v159_v60  ;;  %v136_v36 = vmul.f32 %v625_v10, %v86_v59 }
  0xa1   :  { %v217_v37 = vadd.f32 %v204_v28, %v135_v30  ;;  %v218_v56 = vadd.f32 %v205_v39, %v136_v36  ;;  %v209_v28 = vmul.f32 %v627_v11, %v594_v50 }
  0xa2   :  { %v96_v61 = vpop.permute.xlu0 %95  ;;  %v167_v62 = vpop.permute.xlu1 %166 }
  0xa3   :  { %v206_v55 = vmul.f32 %v627_v11, %v167_v62  ;;  %v138_v46 = vmul.f32 %v625_v10, %v96_v61 }
  0xa6   :  { %v604_v0 = vpop.permute.xlu0 %105  ;;  %v606_v1 = vpop.permute.xlu1 %174 }
  0xa7   :  { %v208_v47 = vmul.f32 %v627_v11, %v606_v1  ;;  %v140_v48 = vmul.f32 %v625_v10, %v604_v0 }
  0xaa   :  { %v610_v3 = vpop.permute.xlu0 %115  ;;  %v612_v4 = vpop.permute.xlu1 %182 }
  0xab   :  { %v142_v50 = vmul.f32 %v625_v10, %v610_v3 }
  0xae   :  { %v616_v7 = vpop.permute.xlu0 %125  ;;  %v618_v8 = vpop.permute.xlu1 %190 }
  0xb2   :  { %v235_v12 = vpop.permute.xlu0 %234 }
  0xb3   :  { %v230_v13 = vpop.permute.xlu1 %229  ;;  %v293_v24 = vadd.f32 %v235_v12, %v215_v21  ;;  %v219_v12 = vadd.f32 %v206_v55, %v137_v58  ;;  %v139_v21 = vmul.f32 %v625_v10, %v592_v49  ;;  %v210_v49 = vmul.f32 %v627_v11, %v612_v4 }
  0xb4   :  { %v292_v25 = vadd.f32 %v230_v13, %v214_v22  ;;  %v212_v4 = vmul.f32 %v627_v11, %v618_v8  ;;  %v213_v58 = vmul.f32 %v627_v11, %v602_v54 }
  0xb5   :  { %v306_v31 = vmax.f32 %v293_v24, 0.0 }
  0xb6   :  { %v321_v18 = vpop.permute.xlu0 %320  ;;  %v305_v32 = vmax.f32 %v292_v25, 0.0 }
  0xb7   :  { %v240_v19 = vpop.permute.xlu1 %239 }
  0xb8   :  { %v294_v33 = vadd.f32 %v240_v19, %v216_v29  ;;  %v383_v40 = vmul.f32 %v321_v18, %v305_v32  ;;  %v220_v19 = vadd.f32 %v207_v14, %v138_v46 }
  0xba   :  { %v250_v26 = vpop.permute.xlu0 %249  ;;  %v307_v41 = vmax.f32 %v294_v33, 0.0  ;;  %v222_v33 = vadd.f32 %v209_v28, %v140_v48 }
  0xbb   :  { %v245_v27 = vpop.permute.xlu1 %244  ;;  %v296_v60 = vadd.f32 %v250_v26, %v218_v56  ;;  %v221_v26 = vadd.f32 %v208_v47, %v139_v21  ;;  %v143_v56 = vmul.f32 %v625_v10, %v600_v53 }
  0xbc   :  { %v295_v42 = vadd.f32 %v245_v27, %v217_v37 }
  0xbd   :  { %v309_v15 = vmax.f32 %v296_v60, 0.0 }
  0xbe   :  { %v255_v34 = vpop.permute.xlu0 %254  ;;  %v308_v63 = vmax.f32 %v295_v42, 0.0  ;;  %v211_v42 = vmul.f32 %v627_v11, %v598_v52 }
  0xbf   :  { %v326_v35 = vpop.permute.xlu1 %325  ;;  %v297_v62 = vadd.f32 %v255_v34, %v219_v12 }
  0xc0   :  { %v384_v38 = vmul.f32 %v326_v35, %v306_v31  ;;  %v141_v35 = vmul.f32 %v625_v10, %v596_v51 }
  0xc1   :  { %v310_v22 = vmax.f32 %v297_v62, 0.0 }
  0xc2   :  { %v260_v43 = vpop.permute.xlu0 %259  ;;  %v396_v45 = vadd.f32 %v384_v38, %v383_v40  ;;  %v223_v40 = vadd.f32 %v210_v49, %v141_v35 }
  0xc3   :  { %v331_v44 = vpop.permute.xlu1 %330  ;;  %v298_v61 = vadd.f32 %v260_v43, %v220_v19 }
  0xc4   :  { %v385_v57 = vmul.f32 %v331_v44, %v307_v41 }
  0xc5   :  { %v311_v29 = vmax.f32 %v298_v61, 0.0 }
  0xc6   :  { %v397_v59 = vadd.f32 %v396_v45, %v385_v57  ;;  %v265_v6 = vpop.permute.xlu0 %264  ;;  %v144_v45 = vmul.f32 %v625_v10, %v616_v7  ;;  %v224_v57 = vadd.f32 %v211_v42, %v142_v50 }
  0xc7   :  { %v336_v9 = vpop.permute.xlu1 %335  ;;  %v299_v1 = vadd.f32 %v265_v6, %v221_v26 }
  0xc8   :  { %v386_v13 = vmul.f32 %v336_v9, %v308_v63  ;;  %v226_v46 = vadd.f32 %v213_v58, %v144_v45 }
  0xc9   :  { %v312_v36 = vmax.f32 %v299_v1, 0.0 }
  0xca   :  { %v398_v16 = vadd.f32 %v397_v59, %v386_v13  ;;  %v270_v17 = vpop.permute.xlu0 %269  ;;  %v225_v59 = vadd.f32 %v212_v4, %v143_v56 }
  0xcb   :  { %v341_v18 = vpop.permute.xlu1 %340  ;;  %v300_v0 = vadd.f32 %v270_v17, %v222_v33 }
  0xcc   :  { %v387_v20 = vmul.f32 %v341_v18, %v309_v15 }
  0xcd   :  { %v313_v43 = vmax.f32 %v300_v0, 0.0 }
  0xce   :  { %v399_v23 = vadd.f32 %v398_v16, %v387_v20  ;;  %v275_v24 = vpop.permute.xlu0 %274 }
  0xcf   :  { %v346_v25 = vpop.permute.xlu1 %345  ;;  %v301_v44 = vadd.f32 %v275_v24, %v223_v40 }
  0xd0   :  { %v388_v27 = vmul.f32 %v346_v25, %v310_v22 }
  0xd1   :  { %v314_v52 = vmax.f32 %v301_v44, 0.0 }
  0xd2   :  { %v400_v30 = vadd.f32 %v399_v23, %v388_v27  ;;  %v280_v31 = vpop.permute.xlu0 %279 }
  0xd3   :  { %v351_v32 = vpop.permute.xlu1 %350  ;;  %v302_v63 = vadd.f32 %v280_v31, %v224_v57 }
  0xd4   :  { %v389_v34 = vmul.f32 %v351_v32, %v311_v29 }
  0xd5   :  { %v315_v13 = vmax.f32 %v302_v63, 0.0 }
  0xd6   :  { %v401_v37 = vadd.f32 %v400_v30, %v389_v34  ;;  %v285_v38 = vpop.permute.xlu0 %284 }
  0xd7   :  { %v356_v39 = vpop.permute.xlu1 %355  ;;  %v303_v9 = vadd.f32 %v285_v38, %v225_v59 }
  0xd8   :  { %v390_v41 = vmul.f32 %v356_v39, %v312_v36 }
  0xd9   :  { %v316_v7 = vmax.f32 %v303_v9, 0.0 }
  0xda   :  { %v402_v55 = vadd.f32 %v401_v37, %v390_v41  ;;  %v290_v60 = vpop.permute.xlu0 %289 }
  0xdb   :  { %v361_v51 = vpop.permute.xlu1 %360  ;;  %v304_v14 = vadd.f32 %v290_v60, %v226_v46 }
  0xdc   :  { %v391_v3 = vmul.f32 %v361_v51, %v313_v43 }
  0xdd   :  { %v317_v16 = vmax.f32 %v304_v14, 0.0 }
  0xde   :  { %v403_v8 = vadd.f32 %v402_v55, %v391_v3  ;;  %v376_v15 = vpop.permute.xlu0 %375 }
  0xdf   :  { %v366_v6 = vpop.permute.xlu1 %365  ;;  %v394_v17 = vmul.f32 %v376_v15, %v316_v7 }
  0xe0   :  { %v392_v12 = vmul.f32 %v366_v6, %v314_v52 }
  0xe2   :  { %v404_v53 = vadd.f32 %v403_v8, %v392_v12  ;;  %v417_v23 = vpop.permute.xlu0 %416 }
  0xe3   :  { %v371_v62 = vpop.permute.xlu1 %370  ;;  %v422_v25 = vrot.slane %v417_v23, %v130_v5 }
  0xe4   :  { %v393_v10 = vmul.f32 %v371_v62, %v315_v13 }
  0xe6   :  { %v405_v18 = vadd.f32 %v404_v53, %v393_v10 }
  0xe7   :  { %v381_v54 = vpop.permute.xlu1 %380 }
  0xe8   :  { %v395_v11 = vmul.f32 %v381_v54, %v317_v16  ;;  %v406_v47 = vadd.f32 %v405_v18, %v394_v17 }
  0xea   :  { %v407_v19 = vadd.f32 %v406_v47, %v395_v11 }
  0xec   :  { %v408_v20 = vrot.slane %v407_v19, 4 }
  0xee   :  { %v409_v21 = vadd.f32 %v408_v20, %v407_v19 }
  0xf0   :  { %v410_v22 = vrot.slane %v409_v21, 2 }
  0xf2   :  { %v411_v61 = vadd.f32 %v410_v22, %v409_v21 }
  0xf4   :  { %v412_v24 = vrot.slane %v411_v61, 1 }
  0xf6   :  { %v413_v48 = vadd.f32 %v412_v24, %v411_v61 }
  0xf8   :  { %v423_v26 = vadd.f32 %v422_v25, %v413_v48 }
  0xfa   :  { %424 = vst [vmem:[%s679_s5] sm:$0x1] %v423_v26 }

</bundles_post_ra>
